<compile_context>
chip_gen: v7x
topology: tpu7x:2x2x1
jax: 0.10.0
libtpu: 0.0.40
codegen_flags: <defaults>
</compile_context>

<pallas_src>
import functools
import math
from dataclasses import dataclass
from typing import List

import numpy as np
import jax
import jax.numpy as jnp
from jax import lax
from jax.experimental import pallas as pl
from jax.experimental.pallas import tpu as pltpu


# ----------------------------------------------------------------------------
# helpers
# ----------------------------------------------------------------------------
def _pick_tile(dim, candidates=(512, 256, 128)):
    """Largest candidate tile that evenly divides `dim`; otherwise the full dim."""
    for c in candidates:
        if dim >= c and dim % c == 0:
            return c
    return dim


@dataclass
class PastKVHiddenState:
    hidden_ctx_len: int
    resblock_hidden_states: List[jax.Array]

    def detach(self):
        return PastKVHiddenState(
            hidden_ctx_len=self.hidden_ctx_len,
            resblock_hidden_states=[
                None if h is None else lax.stop_gradient(h)
                for h in self.resblock_hidden_states
            ],
        )

    def concat_with(self, new):
        return PastKVHiddenState(
            hidden_ctx_len=self.hidden_ctx_len + new.hidden_ctx_len,
            resblock_hidden_states=[
                jnp.concatenate([t for t in (a, b) if t is not None], axis=-2)
                for a, b in zip(self.resblock_hidden_states, new.resblock_hidden_states)
            ],
        )


# ----------------------------------------------------------------------------
# Kernel 1: token embedding (DMA gather) + position embedding
# ----------------------------------------------------------------------------
def _embed_kernel(start_ref, tok_ref, emb_hbm, pos_hbm, o_ref,
                  emb_buf, pos_buf, sems, *, seq_len):
    # start_ref : (1,) int32 scalar prefetch (SMEM) -- ctx_len
    # tok_ref   : (B, T) int32 scalar prefetch (SMEM) -- token ids
    # emb_hbm   : (Vp, D) embedding table, left in HBM (pl.ANY) -> per-row DMA gather
    # pos_hbm   : (n_ctx, D) position table, left in HBM (pl.ANY)
    # o_ref     : (1, T, D) output block for batch row b
    # emb_buf   : (T, D) VMEM scratch for the gathered token rows
    # pos_buf   : (T, D) VMEM scratch for the position slice (persists across grid steps)
    b = pl.program_id(0)
    s = start_ref[0]

    # Issue all token-row gathers (one (1, D) DMA per token), overlapped with the pos fetch.
    copies = []
    for t in range(seq_len):
        cp = pltpu.make_async_copy(
            emb_hbm.at[pl.ds(tok_ref[b, t], 1), :],
            emb_buf.at[pl.ds(t, 1), :],
            sems.at[t],
        )
        cp.start()
        copies.append(cp)

    # Position slice is fetched from HBM exactly once (scratch persists across the
    # sequential batch grid); every other batch row reuses the VMEM copy.
    @pl.when(b == 0)
    def _():
        cp = pltpu.make_async_copy(
            pos_hbm.at[pl.ds(s, seq_len), :], pos_buf, sems.at[seq_len])
        cp.start()
        cp.wait()

    for cp in copies:
        cp.wait()

    o_ref[0] = (emb_buf[...].astype(jnp.float32)
                + pos_buf[...].astype(jnp.float32)).astype(o_ref.dtype)


def embed_tokens(tokens, emb_w, pos_w, ctx_len, *, act_dtype):
    B, T = tokens.shape
    Vp, D = emb_w.shape
    n_ctx = pos_w.shape[0]
    # Match the PyTorch module's assert (no silent clamping in-kernel).
    assert ctx_len + T <= n_ctx, (
        f"Positional embedding doesnt exist for position {ctx_len + T} (n_ctx={n_ctx}).")
    start = jnp.asarray([ctx_len], dtype=jnp.int32)
    tok = tokens.astype(jnp.int32)

    out = pl.pallas_call(
        functools.partial(_embed_kernel, seq_len=T),
        out_shape=jax.ShapeDtypeStruct((B, T, D), act_dtype),
        grid_spec=pltpu.PrefetchScalarGridSpec(
            num_scalar_prefetch=2,
            grid=(B,),
            in_specs=[
                pl.BlockSpec(memory_space=pl.ANY),   # embedding table stays in HBM
                pl.BlockSpec(memory_space=pl.ANY),   # position table stays in HBM
            ],
            out_specs=pl.BlockSpec((1, T, D), lambda b, start, tok: (b, 0, 0)),
            scratch_shapes=[
                pltpu.VMEM((T, D), emb_w.dtype),
                pltpu.VMEM((T, D), pos_w.dtype),
                pltpu.SemaphoreType.DMA((T + 1,)),
            ],
        ),
        # "arbitrary": the pos slice is fetched on the first grid step and reused.
        compiler_params=pltpu.CompilerParams(dimension_semantics=("arbitrary",)),
    )(start, tok, emb_w, pos_w)
    return out


# ----------------------------------------------------------------------------
# Kernel 2: LayerNorm (fp32 internals, matching the fp16-safe subclass)
# ----------------------------------------------------------------------------
def _layernorm_kernel(x_ref, g_ref, b_ref, o_ref, *, eps):
    x = x_ref[...].astype(jnp.float32)
    mu = jnp.mean(x, axis=-1, keepdims=True)
    xc = x - mu
    var = jnp.mean(xc * xc, axis=-1, keepdims=True)
    y = xc * lax.rsqrt(var + eps)
    y = y * g_ref[...].astype(jnp.float32) + b_ref[...].astype(jnp.float32)
    o_ref[...] = y.astype(o_ref.dtype)


def layer_norm(x2d, gamma, beta, *, eps=1e-5):
    M, D = x2d.shape
    tm = _pick_tile(M, candidates=(1024, 512, 256, 128, 64, 32, 16, 8))
    g2 = gamma.reshape(1, D)
    b2 = beta.reshape(1, D)
    return pl.pallas_call(
        functools.partial(_layernorm_kernel, eps=eps),
        out_shape=jax.ShapeDtypeStruct((M, D), x2d.dtype),
        grid_spec=pltpu.PrefetchScalarGridSpec(
            num_scalar_prefetch=0,
            grid=(M // tm,),
            in_specs=[pl.BlockSpec((tm, D), lambda i: (i, 0)),
                      pl.BlockSpec((1, D), lambda i: (0, 0)),
                      pl.BlockSpec((1, D), lambda i: (0, 0))],
            out_specs=pl.BlockSpec((tm, D), lambda i: (i, 0)),
        ),
        compiler_params=pltpu.CompilerParams(dimension_semantics=("parallel",)),
    )(x2d, g2, b2)


# ----------------------------------------------------------------------------
# Kernel 3: Conv1D-style linear with fused epilogue
#   y = x @ W (+ b); optional quick_gelu; optional out_scale; optional residual add;
#   optional vocab-padding mask; optional transposed-weight contraction (x @ W.T).
# ----------------------------------------------------------------------------
def _linear_kernel(*refs, transpose_w, activation, mask_from, mask_value,
                   block_n, out_scale, has_res, use_acc):
    if has_res:
        x_ref, w_ref, b_ref, res_ref, o_ref, *scratch = refs
    else:
        x_ref, w_ref, b_ref, o_ref, *scratch = refs
        res_ref = None
    acc_ref = scratch[0] if use_acc else o_ref   # accumulate directly in o when f32

    # All grid-position reads hoisted to the top level (never inside pl.when closures).
    j = pl.program_id(1)
    k = pl.program_id(2)
    nk = pl.num_programs(2)

    @pl.when(k == 0)
    def _():
        acc_ref[...] = jnp.zeros(acc_ref.shape, acc_ref.dtype)

    # Operands in their native dtype -> MXU runs bf16-native when acts are bf16;
    # accumulation stays f32 via preferred_element_type.
    if transpose_w:   # x:(tm,tk) @ w:(tn,tk)^T
        part = lax.dot_general(x_ref[...], w_ref[...],
                               (((1,), (1,)), ((), ())),
                               preferred_element_type=jnp.float32)
    else:             # x:(tm,tk) @ w:(tk,tn)
        part = jnp.dot(x_ref[...], w_ref[...], preferred_element_type=jnp.float32)
    acc_ref[...] += part.astype(acc_ref.dtype)

    @pl.when(k == nk - 1)
    def _():
        y = acc_ref[...].astype(jnp.float32) + b_ref[...].astype(jnp.float32)
        if activation == "quick_gelu":
            y = y * jax.nn.sigmoid(1.702 * y)
        if out_scale != 1.0:
            y = y * out_scale
        if has_res:
            y = res_ref[...].astype(jnp.float32) + y
        if mask_from is not None:
            col = j * block_n + lax.broadcasted_iota(jnp.int32, y.shape, 1)
            y = jnp.where(col >= mask_from, mask_value, y)
        o_ref[...] = y.astype(o_ref.dtype)


def linear(x, w, b=None, *, activation="none", residual=None, out_scale=1.0,
           transpose_w=False, mask_from=None, out_dtype=None):
    M, K = x.shape
    if transpose_w:
        N, K2 = w.shape          # (Vp, D) unembedding used as-is, no .T materialization
    else:
        K2, N = w.shape
    assert K == K2
    out_dtype = out_dtype or x.dtype
    if b is None:
        b = jnp.zeros((N,), jnp.float32)
    b2 = b.reshape(1, N)

    tm = _pick_tile(M, candidates=(512, 256, 128))
    tn = _pick_tile(N, candidates=(512, 256, 128))
    tk = _pick_tile(K, candidates=(1024, 512, 256, 128))

    use_acc = (jnp.dtype(out_dtype) != jnp.dtype(jnp.float32))
    has_res = residual is not None
    mask_value = float(-jnp.finfo(out_dtype).max) if mask_from is not None else 0.0

    kernel = functools.partial(
        _linear_kernel, transpose_w=transpose_w, activation=activation,
        mask_from=mask_from, mask_value=mask_value, block_n=tn,
        out_scale=float(out_scale), has_res=has_res, use_acc=use_acc)

    in_specs = [
        pl.BlockSpec((tm, tk), lambda i, j, k: (i, k)),
        (pl.BlockSpec((tn, tk), lambda i, j, k: (j, k)) if transpose_w
         else pl.BlockSpec((tk, tn), lambda i, j, k: (k, j))),
        pl.BlockSpec((1, tn), lambda i, j, k: (0, j)),
    ]
    args = [x, w, b2]
    if has_res:
        in_specs.append(pl.BlockSpec((tm, tn), lambda i, j, k: (i, j)))
        args.append(residual)

    scratch = [pltpu.VMEM((tm, tn), jnp.float32)] if use_acc else []

    return pl.pallas_call(
        kernel,
        out_shape=jax.ShapeDtypeStruct((M, N), out_dtype),
        grid_spec=pltpu.PrefetchScalarGridSpec(
            num_scalar_prefetch=0,
            grid=(M // tm, N // tn, K // tk),
            in_specs=in_specs,
            out_specs=pl.BlockSpec((tm, tn), lambda i, j, k: (i, j)),
            scratch_shapes=scratch,
        ),
        compiler_params=pltpu.CompilerParams(
            dimension_semantics=("parallel", "parallel", "arbitrary"),
            vmem_limit_bytes=64 * 1024 * 1024),
    )(*args)


# ----------------------------------------------------------------------------
# Kernel 4: causal softmax attention on the packed qkv activation
#   in : (B, T, 3*d_attn)   [q | k | v], heads packed along the feature dim
#   out: (B, T, d_attn)     already in the layout c_proj consumes -> no transposes
# ----------------------------------------------------------------------------
def _attn_kernel(qkv_ref, o_ref, *, heads, d_attn, scale, causal_offset):
    qkv = qkv_ref[0]                                  # single lane-dense load (T, 3*d_attn)
    T = qkv.shape[0]
    dh = d_attn // heads

    qi = lax.broadcasted_iota(jnp.int32, (T, T), 0) + causal_offset
    ki = lax.broadcasted_iota(jnp.int32, (T, T), 1)
    causal = ki <= qi

    outs = []
    for h in range(heads):
        # 1/sqrt(dh) folded into q (T*dh mults instead of T*T).
        q = qkv[:, h * dh:(h + 1) * dh] * scale
        k = qkv[:, d_attn + h * dh: d_attn + (h + 1) * dh]
        v = qkv[:, 2 * d_attn + h * dh: 2 * d_attn + (h + 1) * dh]

        s = lax.dot_general(q, k, (((1,), (1,)), ((), ())),
                            preferred_element_type=jnp.float32)      # (T, T)
        s = jnp.where(causal, s, -1e30)
        m = jnp.max(s, axis=-1, keepdims=True)
        p = jnp.exp(s - m)
        l = jnp.sum(p, axis=-1, keepdims=True)
        out = jnp.dot(p.astype(v.dtype), v, preferred_element_type=jnp.float32)
        outs.append(out / l)

    # One lane-dense store of all heads.
    o_ref[0] = jnp.concatenate(outs, axis=-1).astype(o_ref.dtype)


def causal_attention(qkv3, *, heads, d_attn, kv_ctx=0):
    # TODO(synk): flash-style online-softmax KV tiling + causal block skipping + head
    # batching for long sequences / v7x VMEM budget; full-score path is fine at demo sizes.
    B, T, three_d = qkv3.shape
    assert three_d == 3 * d_attn
    dh = d_attn // heads
    kernel = functools.partial(_attn_kernel, heads=heads, d_attn=d_attn,
                               scale=1.0 / math.sqrt(dh), causal_offset=kv_ctx)
    return pl.pallas_call(
        kernel,
        out_shape=jax.ShapeDtypeStruct((B, T, d_attn), qkv3.dtype),
        grid_spec=pltpu.PrefetchScalarGridSpec(
            num_scalar_prefetch=0,
            grid=(B,),
            in_specs=[pl.BlockSpec((1, T, 3 * d_attn), lambda b: (b, 0, 0))],
            out_specs=pl.BlockSpec((1, T, d_attn), lambda b: (b, 0, 0)),
        ),
        compiler_params=pltpu.CompilerParams(dimension_semantics=("parallel",)),
    )(qkv3)


# ----------------------------------------------------------------------------
# Model: params + forward
# ----------------------------------------------------------------------------
def init_transformer_params(key, *, n_ctx, n_vocab, d_model, n_layer, heads,
                            m_attn, m_mlp, init_scale=1.0):
    Vp = int(np.ceil(n_vocab / 128)) * 128
    d_attn = int(m_attn * d_model)
    d_ff = int(m_mlp * d_model)
    assert d_attn % heads == 0
    ks = list(jax.random.split(key, 3 + 4 * n_layer))

    def normal(k, shape, std):
        return std * jax.random.normal(k, shape, dtype=jnp.float32)

    params = {
        "embedding": normal(ks[0], (Vp, d_model), 0.02 * init_scale),
        "pos": normal(ks[1], (n_ctx, d_model), 0.01 * init_scale),
        "unembedding": normal(ks[2], (Vp, d_model), 0.02 * init_scale),
        "ln_f": {"g": jnp.ones((d_model,), jnp.float32),
                 "b": jnp.zeros((d_model,), jnp.float32)},
        "blocks": [],
    }
    for i in range(n_layer):
        k0, k1, k2, k3 = ks[3 + 4 * i: 7 + 4 * i]
        params["blocks"].append({
            "ln_1": {"g": jnp.ones((d_model,), jnp.float32),
                     "b": jnp.zeros((d_model,), jnp.float32)},
            "ln_2": {"g": jnp.ones((d_model,), jnp.float32),
                     "b": jnp.zeros((d_model,), jnp.float32)},
            "attn": {"c_attn_w": normal(k0, (d_model, 3 * d_attn), 0.02 * init_scale),
                     "c_attn_b": jnp.zeros((3 * d_attn,), jnp.float32),
                     "c_proj_w": normal(k1, (d_attn, d_model), 0.02 * init_scale),
                     "c_proj_b": jnp.zeros((d_model,), jnp.float32)},
            "mlp": {"c_fc_w": normal(k2, (d_model, d_ff), 0.02 * init_scale),
                    "c_fc_b": jnp.zeros((d_ff,), jnp.float32),
                    "c_proj_w": normal(k3, (d_ff, d_model), 0.02 * init_scale),
                    "c_proj_b": jnp.zeros((d_model,), jnp.float32)},
        })
    return params


def transformer_forward(params, tokens, *, n_vocab, heads, res_scale=1.0,
                        hidden_state=None, act_dtype=jnp.float32):
    # TODO(synk): KV-cache fast-sampling path (hidden_state != None) and model-parallel
    # collectives are not wired into the attention kernel; demo uses hidden_state=None.
    ctx_len = 0 if hidden_state is None else hidden_state.hidden_ctx_len

    x = embed_tokens(tokens, params["embedding"], params["pos"], ctx_len,
                     act_dtype=act_dtype)                       # (B, T, D)
    B, T, D = x.shape
    new_hidden = []

    for blk in params["blocks"]:
        x2 = x.reshape(B * T, D)
        h = layer_norm(x2, blk["ln_1"]["g"], blk["ln_1"]["b"])               # ln_1
        qkv = linear(h, blk["attn"]["c_attn_w"], blk["attn"]["c_attn_b"],
                     out_dtype=act_dtype)                                     # (B*T, 3*d_attn)
        d_attn = blk["attn"]["c_proj_w"].shape[0]
        qkv3 = qkv.reshape(B, T, 3 * d_attn)

        a_core = causal_attention(qkv3, heads=heads, d_attn=d_attn,
                                  kv_ctx=ctx_len)                            # (B, T, d_attn)

        # r = x + attn(ln_1(x))   (residual fused into the c_proj epilogue)
        r = linear(a_core.reshape(B * T, d_attn),
                   blk["attn"]["c_proj_w"], blk["attn"]["c_proj_b"],
                   residual=x2, out_dtype=act_dtype)                          # (B*T, D)

        h2 = layer_norm(r, blk["ln_2"]["g"], blk["ln_2"]["b"])                # ln_2
        mfc = linear(h2, blk["mlp"]["c_fc_w"], blk["mlp"]["c_fc_b"],
                     activation="quick_gelu", out_dtype=act_dtype)

        # final = x + res_scale*(a + m) = (x + res_scale*a) + res_scale*m
        if res_scale == 1.0:
            base = r
        else:
            base = x2 + res_scale * (r - x2)
        xn = linear(mfc, blk["mlp"]["c_proj_w"], blk["mlp"]["c_proj_b"],
                    residual=base, out_scale=res_scale, out_dtype=act_dtype)  # (B*T, D)
        x = xn.reshape(B, T, D)

        # hidden state = [k | v] along the feature dim (exactly qkv[..., d_attn:]).
        new_hidden.append(qkv3[:, :, d_attn:].astype(act_dtype))

    assert x.dtype == act_dtype
    assert len(new_hidden) == len(params["blocks"])

    acts2 = layer_norm(x.reshape(B * T, D), params["ln_f"]["g"], params["ln_f"]["b"])  # ln_f
    acts = acts2.reshape(B, T, D)
    # Unembedding contracts against the (Vp, D) weight directly (no .T materialization);
    # vocab-padding mask fused into the epilogue.
    logits = linear(acts2, params["unembedding"], None, transpose_w=True,
                    mask_from=n_vocab, out_dtype=act_dtype)
    logits = logits.reshape(B, T, -1)

    return {"acts": acts,
            "logits": logits,
            "hidden_state": PastKVHiddenState(hidden_ctx_len=T,
                                              resblock_hidden_states=new_hidden)}


# ----------------------------------------------------------------------------
# Pure-jnp reference (for correctness check)
# ----------------------------------------------------------------------------
def reference_forward(params, tokens, *, n_vocab, heads, res_scale=1.0,
                      act_dtype=jnp.float32, ctx_len=0):
    hp = lax.Precision.HIGHEST
    T = tokens.shape[1]
    D = params["pos"].shape[1]
    emb = params["embedding"][tokens]
    pos = lax.dynamic_slice(params["pos"], (ctx_len, 0), (T, D))
    x = (emb + pos[None]).astype(act_dtype)

    def ln(z, g, b, eps=1e-5):
        zf = z.astype(jnp.float32)
        mu = zf.mean(-1, keepdims=True)
        var = ((zf - mu) ** 2).mean(-1, keepdims=True)
        return (((zf - mu) * lax.rsqrt(var + eps)) * g + b).astype(z.dtype)

    for blk in params["blocks"]:
        h = ln(x, blk["ln_1"]["g"], blk["ln_1"]["b"])
        qkv = jnp.einsum('btd,de->bte', h, blk["attn"]["c_attn_w"], precision=hp) + blk["attn"]["c_attn_b"]
        d_attn = blk["attn"]["c_proj_w"].shape[0]
        q, k, v = jnp.split(qkv, [d_attn, 2 * d_attn], axis=-1)
        B = q.shape[0]
        dh = d_attn // heads
        qh = q.reshape(B, T, heads, dh).transpose(0, 2, 1, 3)
        kh = k.reshape(B, T, heads, dh).transpose(0, 2, 1, 3)
        vh = v.reshape(B, T, heads, dh).transpose(0, 2, 1, 3)
        s = jnp.einsum('bhqd,bhkd->bhqk', qh, kh, precision=hp) / math.sqrt(dh)
        mask = jnp.tril(jnp.ones((T, T), bool))
        s = jnp.where(mask, s, -1e30)
        p = jax.nn.softmax(s, axis=-1)
        ac = jnp.einsum('bhqk,bhkd->bhqd', p, vh, precision=hp)
        ac = ac.transpose(0, 2, 1, 3).reshape(B, T, d_attn)
        a = jnp.einsum('btd,de->bte', ac, blk["attn"]["c_proj_w"], precision=hp) + blk["attn"]["c_proj_b"]
        r = x + a
        h2 = ln(r, blk["ln_2"]["g"], blk["ln_2"]["b"])
        m = jnp.einsum('btd,de->bte', h2, blk["mlp"]["c_fc_w"], precision=hp) + blk["mlp"]["c_fc_b"]
        m = m * jax.nn.sigmoid(1.702 * m)
        m = jnp.einsum('btd,de->bte', m, blk["mlp"]["c_proj_w"], precision=hp) + blk["mlp"]["c_proj_b"]
        x = x + res_scale * (a + m)

    acts = ln(x, params["ln_f"]["g"], params["ln_f"]["b"])
    logits = jnp.einsum('btd,vd->btv', acts, params["unembedding"], precision=hp)
    logits = logits.at[:, :, n_vocab:].set(-jnp.finfo(logits.dtype).max)
    return acts, logits


# ----------------------------------------------------------------------------
# Demo
# ----------------------------------------------------------------------------
if __name__ == "__main__":
    key = jax.random.PRNGKey(0)
    cfg = dict(n_ctx=16, n_vocab=100, d_model=128, n_layer=2, heads=1,
               m_attn=0.25, m_mlp=1.0, init_scale=1.0)
    res_scale = 1.0   # Transformer(res_scale=False) -> 1.0

    pkey, tkey = jax.random.split(key)
    params = init_transformer_params(pkey, **cfg)

    B, T = 2, 8
    tokens = jax.random.randint(tkey, (B, T), 0, cfg["n_vocab"], dtype=jnp.int32)
    assert int(tokens.min()) >= 0 and int(tokens.max()) < cfg["n_vocab"]

    out = transformer_forward(params, tokens, n_vocab=cfg["n_vocab"],
                              heads=cfg["heads"], res_scale=res_scale,
                              act_dtype=jnp.float32)
    acts = jax.block_until_ready(out["acts"])
    logits = jax.block_until_ready(out["logits"])

    ref_acts, ref_logits = reference_forward(params, tokens, n_vocab=cfg["n_vocab"],
                                             heads=cfg["heads"], res_scale=res_scale,
                                             act_dtype=jnp.float32)

    assert acts.shape == (B, T, cfg["d_model"]) and acts.dtype == jnp.float32
    assert logits.shape == (B, T, params["unembedding"].shape[0])
    np.testing.assert_allclose(np.asarray(acts), np.asarray(ref_acts), rtol=2e-2, atol=2e-3)
    np.testing.assert_allclose(np.asarray(logits), np.asarray(ref_logits), rtol=2e-2, atol=2e-3)
    assert out["hidden_state"].hidden_ctx_len == T
    assert len(out["hidden_state"].resblock_hidden_states) == cfg["n_layer"]
    assert all(h.dtype == jnp.float32 for h in out["hidden_state"].resblock_hidden_states)

    print("KERNEL_OK")
</pallas_src>

<mosaic_0001>
module attributes {stable_mosaic.version = 11 : i64} {
  func.func @_embed_kernel(%arg0: i32, %arg1: memref<1xi32, #tpu.memory_space<smem>>, %arg2: memref<2x8xi32, #tpu.memory_space<smem>>, %arg3: memref<128x128xf32, #tpu.memory_space<any>>, %arg4: memref<16x128xf32, #tpu.memory_space<any>>, %arg5: memref<1x8x128xf32, #tpu.memory_space<vmem>>, %arg6: memref<8x128xf32, #tpu.memory_space<vmem>>, %arg7: memref<8x128xf32, #tpu.memory_space<vmem>>, %arg8: memref<9x!tpu.dma_semaphore, #tpu.memory_space<semaphore_mem>>) attributes {dimension_semantics = [#tpu.dimension_semantics<arbitrary>], iteration_bounds = array<i64: 2>, scalar_prefetch = 2 : i64, scratch_operands = 3 : i64, tpu.core_type = #tpu.core_type<tc>, window_params = [{}, {}, {transform_indices = @transform_2, window_bounds = array<i64: 1, 8, 128>}]} {
    %c0 = arith.constant 0 : index
    %0 = memref.load %arg1[%c0] : memref<1xi32, #tpu.memory_space<smem>>
    %1 = arith.index_cast %arg0 : i32 to index
    %c0_0 = arith.constant 0 : index
    %2 = memref.load %arg2[%1, %c0_0] : memref<2x8xi32, #tpu.memory_space<smem>>
    %c0_i32 = arith.constant 0 : i32
    %c0_i32_1 = arith.constant 0 : i32
    %3 = tpu.memref_slice %arg3[%2, %c0_i32_1] : memref<128x128xf32, #tpu.memory_space<any>> -> memref<1x128xf32, #tpu.memory_space<any>>
    %c0_i32_2 = arith.constant 0 : i32
    %c0_i32_3 = arith.constant 0 : i32
    %4 = tpu.memref_slice %arg6[%c0_i32_2, %c0_i32_3] : memref<8x128xf32, #tpu.memory_space<vmem>> -> memref<1x128xf32, #tpu.memory_space<vmem>>
    %5 = tpu.memref_slice %arg8[%c0_i32] : memref<9x!tpu.dma_semaphore, #tpu.memory_space<semaphore_mem>> -> memref<1x!tpu.dma_semaphore, #tpu.memory_space<semaphore_mem>>
    %6 = tpu.memref_squeeze %5 : memref<1x!tpu.dma_semaphore, #tpu.memory_space<semaphore_mem>> -> memref<!tpu.dma_semaphore, #tpu.memory_space<semaphore_mem>>
    tpu.enqueue_dma source(%3 : memref<1x128xf32, #tpu.memory_space<any>>) target(%4 : memref<1x128xf32, #tpu.memory_space<vmem>>) target_semaphore(%6 : memref<!tpu.dma_semaphore, #tpu.memory_space<semaphore_mem>>)
    %7 = arith.index_cast %arg0 : i32 to index
    %c1 = arith.constant 1 : index
    %8 = memref.load %arg2[%7, %c1] : memref<2x8xi32, #tpu.memory_space<smem>>
    %c1_i32 = arith.constant 1 : i32
    %c0_i32_4 = arith.constant 0 : i32
    %9 = tpu.memref_slice %arg3[%8, %c0_i32_4] : memref<128x128xf32, #tpu.memory_space<any>> -> memref<1x128xf32, #tpu.memory_space<any>>
    %c1_i32_5 = arith.constant 1 : i32
    %c0_i32_6 = arith.constant 0 : i32
    %10 = tpu.memref_slice %arg6[%c1_i32_5, %c0_i32_6] : memref<8x128xf32, #tpu.memory_space<vmem>> -> memref<1x128xf32, #tpu.memory_space<vmem>>
    %11 = tpu.memref_slice %arg8[%c1_i32] : memref<9x!tpu.dma_semaphore, #tpu.memory_space<semaphore_mem>> -> memref<1x!tpu.dma_semaphore, #tpu.memory_space<semaphore_mem>>
    %12 = tpu.memref_squeeze %11 : memref<1x!tpu.dma_semaphore, #tpu.memory_space<semaphore_mem>> -> memref<!tpu.dma_semaphore, #tpu.memory_space<semaphore_mem>>
    tpu.enqueue_dma source(%9 : memref<1x128xf32, #tpu.memory_space<any>>) target(%10 : memref<1x128xf32, #tpu.memory_space<vmem>>) target_semaphore(%12 : memref<!tpu.dma_semaphore, #tpu.memory_space<semaphore_mem>>)
    %13 = arith.index_cast %arg0 : i32 to index
    %c2 = arith.constant 2 : index
    %14 = memref.load %arg2[%13, %c2] : memref<2x8xi32, #tpu.memory_space<smem>>
    %c2_i32 = arith.constant 2 : i32
    %c0_i32_7 = arith.constant 0 : i32
    %15 = tpu.memref_slice %arg3[%14, %c0_i32_7] : memref<128x128xf32, #tpu.memory_space<any>> -> memref<1x128xf32, #tpu.memory_space<any>>
    %c2_i32_8 = arith.constant 2 : i32
    %c0_i32_9 = arith.constant 0 : i32
    %16 = tpu.memref_slice %arg6[%c2_i32_8, %c0_i32_9] : memref<8x128xf32, #tpu.memory_space<vmem>> -> memref<1x128xf32, #tpu.memory_space<vmem>>
    %17 = tpu.memref_slice %arg8[%c2_i32] : memref<9x!tpu.dma_semaphore, #tpu.memory_space<semaphore_mem>> -> memref<1x!tpu.dma_semaphore, #tpu.memory_space<semaphore_mem>>
    %18 = tpu.memref_squeeze %17 : memref<1x!tpu.dma_semaphore, #tpu.memory_space<semaphore_mem>> -> memref<!tpu.dma_semaphore, #tpu.memory_space<semaphore_mem>>
    tpu.enqueue_dma source(%15 : memref<1x128xf32, #tpu.memory_space<any>>) target(%16 : memref<1x128xf32, #tpu.memory_space<vmem>>) target_semaphore(%18 : memref<!tpu.dma_semaphore, #tpu.memory_space<semaphore_mem>>)
    %19 = arith.index_cast %arg0 : i32 to index
    %c3 = arith.constant 3 : index
    %20 = memref.load %arg2[%19, %c3] : memref<2x8xi32, #tpu.memory_space<smem>>
    %c3_i32 = arith.constant 3 : i32
    %c0_i32_10 = arith.constant 0 : i32
    %21 = tpu.memref_slice %arg3[%20, %c0_i32_10] : memref<128x128xf32, #tpu.memory_space<any>> -> memref<1x128xf32, #tpu.memory_space<any>>
    %c3_i32_11 = arith.constant 3 : i32
    %c0_i32_12 = arith.constant 0 : i32
    %22 = tpu.memref_slice %arg6[%c3_i32_11, %c0_i32_12] : memref<8x128xf32, #tpu.memory_space<vmem>> -> memref<1x128xf32, #tpu.memory_space<vmem>>
    %23 = tpu.memref_slice %arg8[%c3_i32] : memref<9x!tpu.dma_semaphore, #tpu.memory_space<semaphore_mem>> -> memref<1x!tpu.dma_semaphore, #tpu.memory_space<semaphore_mem>>
    %24 = tpu.memref_squeeze %23 : memref<1x!tpu.dma_semaphore, #tpu.memory_space<semaphore_mem>> -> memref<!tpu.dma_semaphore, #tpu.memory_space<semaphore_mem>>
    tpu.enqueue_dma source(%21 : memref<1x128xf32, #tpu.memory_space<any>>) target(%22 : memref<1x128xf32, #tpu.memory_space<vmem>>) target_semaphore(%24 : memref<!tpu.dma_semaphore, #tpu.memory_space<semaphore_mem>>)
    %25 = arith.index_cast %arg0 : i32 to index
    %c4 = arith.constant 4 : index
    %26 = memref.load %arg2[%25, %c4] : memref<2x8xi32, #tpu.memory_space<smem>>
    %c4_i32 = arith.constant 4 : i32
    %c0_i32_13 = arith.constant 0 : i32
    %27 = tpu.memref_slice %arg3[%26, %c0_i32_13] : memref<128x128xf32, #tpu.memory_space<any>> -> memref<1x128xf32, #tpu.memory_space<any>>
    %c4_i32_14 = arith.constant 4 : i32
    %c0_i32_15 = arith.constant 0 : i32
    %28 = tpu.memref_slice %arg6[%c4_i32_14, %c0_i32_15] : memref<8x128xf32, #tpu.memory_space<vmem>> -> memref<1x128xf32, #tpu.memory_space<vmem>>
    %29 = tpu.memref_slice %arg8[%c4_i32] : memref<9x!tpu.dma_semaphore, #tpu.memory_space<semaphore_mem>> -> memref<1x!tpu.dma_semaphore, #tpu.memory_space<semaphore_mem>>
    %30 = tpu.memref_squeeze %29 : memref<1x!tpu.dma_semaphore, #tpu.memory_space<semaphore_mem>> -> memref<!tpu.dma_semaphore, #tpu.memory_space<semaphore_mem>>
    tpu.enqueue_dma source(%27 : memref<1x128xf32, #tpu.memory_space<any>>) target(%28 : memref<1x128xf32, #tpu.memory_space<vmem>>) target_semaphore(%30 : memref<!tpu.dma_semaphore, #tpu.memory_space<semaphore_mem>>)
    %31 = arith.index_cast %arg0 : i32 to index
    %c5 = arith.constant 5 : index
    %32 = memref.load %arg2[%31, %c5] : memref<2x8xi32, #tpu.memory_space<smem>>
    %c5_i32 = arith.constant 5 : i32
    %c0_i32_16 = arith.constant 0 : i32
    %33 = tpu.memref_slice %arg3[%32, %c0_i32_16] : memref<128x128xf32, #tpu.memory_space<any>> -> memref<1x128xf32, #tpu.memory_space<any>>
    %c5_i32_17 = arith.constant 5 : i32
    %c0_i32_18 = arith.constant 0 : i32
    %34 = tpu.memref_slice %arg6[%c5_i32_17, %c0_i32_18] : memref<8x128xf32, #tpu.memory_space<vmem>> -> memref<1x128xf32, #tpu.memory_space<vmem>>
    %35 = tpu.memref_slice %arg8[%c5_i32] : memref<9x!tpu.dma_semaphore, #tpu.memory_space<semaphore_mem>> -> memref<1x!tpu.dma_semaphore, #tpu.memory_space<semaphore_mem>>
    %36 = tpu.memref_squeeze %35 : memref<1x!tpu.dma_semaphore, #tpu.memory_space<semaphore_mem>> -> memref<!tpu.dma_semaphore, #tpu.memory_space<semaphore_mem>>
    tpu.enqueue_dma source(%33 : memref<1x128xf32, #tpu.memory_space<any>>) target(%34 : memref<1x128xf32, #tpu.memory_space<vmem>>) target_semaphore(%36 : memref<!tpu.dma_semaphore, #tpu.memory_space<semaphore_mem>>)
    %37 = arith.index_cast %arg0 : i32 to index
    %c6 = arith.constant 6 : index
    %38 = memref.load %arg2[%37, %c6] : memref<2x8xi32, #tpu.memory_space<smem>>
    %c6_i32 = arith.constant 6 : i32
    %c0_i32_19 = arith.constant 0 : i32
    %39 = tpu.memref_slice %arg3[%38, %c0_i32_19] : memref<128x128xf32, #tpu.memory_space<any>> -> memref<1x128xf32, #tpu.memory_space<any>>
    %c6_i32_20 = arith.constant 6 : i32
    %c0_i32_21 = arith.constant 0 : i32
    %40 = tpu.memref_slice %arg6[%c6_i32_20, %c0_i32_21] : memref<8x128xf32, #tpu.memory_space<vmem>> -> memref<1x128xf32, #tpu.memory_space<vmem>>
    %41 = tpu.memref_slice %arg8[%c6_i32] : memref<9x!tpu.dma_semaphore, #tpu.memory_space<semaphore_mem>> -> memref<1x!tpu.dma_semaphore, #tpu.memory_space<semaphore_mem>>
    %42 = tpu.memref_squeeze %41 : memref<1x!tpu.dma_semaphore, #tpu.memory_space<semaphore_mem>> -> memref<!tpu.dma_semaphore, #tpu.memory_space<semaphore_mem>>
    tpu.enqueue_dma source(%39 : memref<1x128xf32, #tpu.memory_space<any>>) target(%40 : memref<1x128xf32, #tpu.memory_space<vmem>>) target_semaphore(%42 : memref<!tpu.dma_semaphore, #tpu.memory_space<semaphore_mem>>)
    %43 = arith.index_cast %arg0 : i32 to index
    %c7 = arith.constant 7 : index
    %44 = memref.load %arg2[%43, %c7] : memref<2x8xi32, #tpu.memory_space<smem>>
    %c7_i32 = arith.constant 7 : i32
    %c0_i32_22 = arith.constant 0 : i32
    %45 = tpu.memref_slice %arg3[%44, %c0_i32_22] : memref<128x128xf32, #tpu.memory_space<any>> -> memref<1x128xf32, #tpu.memory_space<any>>
    %c7_i32_23 = arith.constant 7 : i32
    %c0_i32_24 = arith.constant 0 : i32
    %46 = tpu.memref_slice %arg6[%c7_i32_23, %c0_i32_24] : memref<8x128xf32, #tpu.memory_space<vmem>> -> memref<1x128xf32, #tpu.memory_space<vmem>>
    %47 = tpu.memref_slice %arg8[%c7_i32] : memref<9x!tpu.dma_semaphore, #tpu.memory_space<semaphore_mem>> -> memref<1x!tpu.dma_semaphore, #tpu.memory_space<semaphore_mem>>
    %48 = tpu.memref_squeeze %47 : memref<1x!tpu.dma_semaphore, #tpu.memory_space<semaphore_mem>> -> memref<!tpu.dma_semaphore, #tpu.memory_space<semaphore_mem>>
    tpu.enqueue_dma source(%45 : memref<1x128xf32, #tpu.memory_space<any>>) target(%46 : memref<1x128xf32, #tpu.memory_space<vmem>>) target_semaphore(%48 : memref<!tpu.dma_semaphore, #tpu.memory_space<semaphore_mem>>)
    %c0_i32_25 = arith.constant 0 : i32
    %49 = arith.cmpi eq, %arg0, %c0_i32_25 : i32
    %50 = arith.extui %49 : i1 to i32
    %c0_i32_26 = arith.constant 0 : i32
    %51 = arith.cmpi ne, %50, %c0_i32_26 : i32
    scf.if %51 {
      %c8_i32 = arith.constant 8 : i32
      %c0_i32_66 = arith.constant 0 : i32
      %90 = tpu.memref_slice %arg4[%0, %c0_i32_66] : memref<16x128xf32, #tpu.memory_space<any>> -> memref<8x128xf32, #tpu.memory_space<any>>
      %91 = tpu.memref_slice %arg8[%c8_i32] : memref<9x!tpu.dma_semaphore, #tpu.memory_space<semaphore_mem>> -> memref<1x!tpu.dma_semaphore, #tpu.memory_space<semaphore_mem>>
      %92 = tpu.memref_squeeze %91 : memref<1x!tpu.dma_semaphore, #tpu.memory_space<semaphore_mem>> -> memref<!tpu.dma_semaphore, #tpu.memory_space<semaphore_mem>>
      tpu.enqueue_dma source(%90 : memref<8x128xf32, #tpu.memory_space<any>>) target(%arg7 : memref<8x128xf32, #tpu.memory_space<vmem>>) target_semaphore(%92 : memref<!tpu.dma_semaphore, #tpu.memory_space<semaphore_mem>>)
      %c8_i32_67 = arith.constant 8 : i32
      %c0_i32_68 = arith.constant 0 : i32
      %93 = tpu.memref_slice %arg4[%0, %c0_i32_68] : memref<16x128xf32, #tpu.memory_space<any>> -> memref<8x128xf32, #tpu.memory_space<any>>
      %94 = tpu.memref_slice %arg8[%c8_i32_67] : memref<9x!tpu.dma_semaphore, #tpu.memory_space<semaphore_mem>> -> memref<1x!tpu.dma_semaphore, #tpu.memory_space<semaphore_mem>>
      %95 = tpu.memref_squeeze %94 : memref<1x!tpu.dma_semaphore, #tpu.memory_space<semaphore_mem>> -> memref<!tpu.dma_semaphore, #tpu.memory_space<semaphore_mem>>
      tpu.wait_dma2 semaphore(%95 : memref<!tpu.dma_semaphore, #tpu.memory_space<semaphore_mem>>) src(%93 : memref<8x128xf32, #tpu.memory_space<any>>) dst(%arg7 : memref<8x128xf32, #tpu.memory_space<vmem>>)
    } else {
    }
    %c0_i32_27 = arith.constant 0 : i32
    %c0_i32_28 = arith.constant 0 : i32
    %52 = tpu.memref_slice %arg3[%2, %c0_i32_28] : memref<128x128xf32, #tpu.memory_space<any>> -> memref<1x128xf32, #tpu.memory_space<any>>
    %c0_i32_29 = arith.constant 0 : i32
    %c0_i32_30 = arith.constant 0 : i32
    %53 = tpu.memref_slice %arg6[%c0_i32_29, %c0_i32_30] : memref<8x128xf32, #tpu.memory_space<vmem>> -> memref<1x128xf32, #tpu.memory_space<vmem>>
    %54 = tpu.memref_slice %arg8[%c0_i32_27] : memref<9x!tpu.dma_semaphore, #tpu.memory_space<semaphore_mem>> -> memref<1x!tpu.dma_semaphore, #tpu.memory_space<semaphore_mem>>
    %55 = tpu.memref_squeeze %54 : memref<1x!tpu.dma_semaphore, #tpu.memory_space<semaphore_mem>> -> memref<!tpu.dma_semaphore, #tpu.memory_space<semaphore_mem>>
    tpu.wait_dma2 semaphore(%55 : memref<!tpu.dma_semaphore, #tpu.memory_space<semaphore_mem>>) src(%52 : memref<1x128xf32, #tpu.memory_space<any>>) dst(%53 : memref<1x128xf32, #tpu.memory_space<vmem>>)
    %c1_i32_31 = arith.constant 1 : i32
    %c0_i32_32 = arith.constant 0 : i32
    %56 = tpu.memref_slice %arg3[%8, %c0_i32_32] : memref<128x128xf32, #tpu.memory_space<any>> -> memref<1x128xf32, #tpu.memory_space<any>>
    %c1_i32_33 = arith.constant 1 : i32
    %c0_i32_34 = arith.constant 0 : i32
    %57 = tpu.memref_slice %arg6[%c1_i32_33, %c0_i32_34] : memref<8x128xf32, #tpu.memory_space<vmem>> -> memref<1x128xf32, #tpu.memory_space<vmem>>
    %58 = tpu.memref_slice %arg8[%c1_i32_31] : memref<9x!tpu.dma_semaphore, #tpu.memory_space<semaphore_mem>> -> memref<1x!tpu.dma_semaphore, #tpu.memory_space<semaphore_mem>>
    %59 = tpu.memref_squeeze %58 : memref<1x!tpu.dma_semaphore, #tpu.memory_space<semaphore_mem>> -> memref<!tpu.dma_semaphore, #tpu.memory_space<semaphore_mem>>
    tpu.wait_dma2 semaphore(%59 : memref<!tpu.dma_semaphore, #tpu.memory_space<semaphore_mem>>) src(%56 : memref<1x128xf32, #tpu.memory_space<any>>) dst(%57 : memref<1x128xf32, #tpu.memory_space<vmem>>)
    %c2_i32_35 = arith.constant 2 : i32
    %c0_i32_36 = arith.constant 0 : i32
    %60 = tpu.memref_slice %arg3[%14, %c0_i32_36] : memref<128x128xf32, #tpu.memory_space<any>> -> memref<1x128xf32, #tpu.memory_space<any>>
    %c2_i32_37 = arith.constant 2 : i32
    %c0_i32_38 = arith.constant 0 : i32
    %61 = tpu.memref_slice %arg6[%c2_i32_37, %c0_i32_38] : memref<8x128xf32, #tpu.memory_space<vmem>> -> memref<1x128xf32, #tpu.memory_space<vmem>>
    %62 = tpu.memref_slice %arg8[%c2_i32_35] : memref<9x!tpu.dma_semaphore, #tpu.memory_space<semaphore_mem>> -> memref<1x!tpu.dma_semaphore, #tpu.memory_space<semaphore_mem>>
    %63 = tpu.memref_squeeze %62 : memref<1x!tpu.dma_semaphore, #tpu.memory_space<semaphore_mem>> -> memref<!tpu.dma_semaphore, #tpu.memory_space<semaphore_mem>>
    tpu.wait_dma2 semaphore(%63 : memref<!tpu.dma_semaphore, #tpu.memory_space<semaphore_mem>>) src(%60 : memref<1x128xf32, #tpu.memory_space<any>>) dst(%61 : memref<1x128xf32, #tpu.memory_space<vmem>>)
    %c3_i32_39 = arith.constant 3 : i32
    %c0_i32_40 = arith.constant 0 : i32
    %64 = tpu.memref_slice %arg3[%20, %c0_i32_40] : memref<128x128xf32, #tpu.memory_space<any>> -> memref<1x128xf32, #tpu.memory_space<any>>
    %c3_i32_41 = arith.constant 3 : i32
    %c0_i32_42 = arith.constant 0 : i32
    %65 = tpu.memref_slice %arg6[%c3_i32_41, %c0_i32_42] : memref<8x128xf32, #tpu.memory_space<vmem>> -> memref<1x128xf32, #tpu.memory_space<vmem>>
    %66 = tpu.memref_slice %arg8[%c3_i32_39] : memref<9x!tpu.dma_semaphore, #tpu.memory_space<semaphore_mem>> -> memref<1x!tpu.dma_semaphore, #tpu.memory_space<semaphore_mem>>
    %67 = tpu.memref_squeeze %66 : memref<1x!tpu.dma_semaphore, #tpu.memory_space<semaphore_mem>> -> memref<!tpu.dma_semaphore, #tpu.memory_space<semaphore_mem>>
    tpu.wait_dma2 semaphore(%67 : memref<!tpu.dma_semaphore, #tpu.memory_space<semaphore_mem>>) src(%64 : memref<1x128xf32, #tpu.memory_space<any>>) dst(%65 : memref<1x128xf32, #tpu.memory_space<vmem>>)
    %c4_i32_43 = arith.constant 4 : i32
    %c0_i32_44 = arith.constant 0 : i32
    %68 = tpu.memref_slice %arg3[%26, %c0_i32_44] : memref<128x128xf32, #tpu.memory_space<any>> -> memref<1x128xf32, #tpu.memory_space<any>>
    %c4_i32_45 = arith.constant 4 : i32
    %c0_i32_46 = arith.constant 0 : i32
    %69 = tpu.memref_slice %arg6[%c4_i32_45, %c0_i32_46] : memref<8x128xf32, #tpu.memory_space<vmem>> -> memref<1x128xf32, #tpu.memory_space<vmem>>
    %70 = tpu.memref_slice %arg8[%c4_i32_43] : memref<9x!tpu.dma_semaphore, #tpu.memory_space<semaphore_mem>> -> memref<1x!tpu.dma_semaphore, #tpu.memory_space<semaphore_mem>>
    %71 = tpu.memref_squeeze %70 : memref<1x!tpu.dma_semaphore, #tpu.memory_space<semaphore_mem>> -> memref<!tpu.dma_semaphore, #tpu.memory_space<semaphore_mem>>
    tpu.wait_dma2 semaphore(%71 : memref<!tpu.dma_semaphore, #tpu.memory_space<semaphore_mem>>) src(%68 : memref<1x128xf32, #tpu.memory_space<any>>) dst(%69 : memref<1x128xf32, #tpu.memory_space<vmem>>)
    %c5_i32_47 = arith.constant 5 : i32
    %c0_i32_48 = arith.constant 0 : i32
    %72 = tpu.memref_slice %arg3[%32, %c0_i32_48] : memref<128x128xf32, #tpu.memory_space<any>> -> memref<1x128xf32, #tpu.memory_space<any>>
    %c5_i32_49 = arith.constant 5 : i32
    %c0_i32_50 = arith.constant 0 : i32
    %73 = tpu.memref_slice %arg6[%c5_i32_49, %c0_i32_50] : memref<8x128xf32, #tpu.memory_space<vmem>> -> memref<1x128xf32, #tpu.memory_space<vmem>>
    %74 = tpu.memref_slice %arg8[%c5_i32_47] : memref<9x!tpu.dma_semaphore, #tpu.memory_space<semaphore_mem>> -> memref<1x!tpu.dma_semaphore, #tpu.memory_space<semaphore_mem>>
    %75 = tpu.memref_squeeze %74 : memref<1x!tpu.dma_semaphore, #tpu.memory_space<semaphore_mem>> -> memref<!tpu.dma_semaphore, #tpu.memory_space<semaphore_mem>>
    tpu.wait_dma2 semaphore(%75 : memref<!tpu.dma_semaphore, #tpu.memory_space<semaphore_mem>>) src(%72 : memref<1x128xf32, #tpu.memory_space<any>>) dst(%73 : memref<1x128xf32, #tpu.memory_space<vmem>>)
    %c6_i32_51 = arith.constant 6 : i32
    %c0_i32_52 = arith.constant 0 : i32
    %76 = tpu.memref_slice %arg3[%38, %c0_i32_52] : memref<128x128xf32, #tpu.memory_space<any>> -> memref<1x128xf32, #tpu.memory_space<any>>
    %c6_i32_53 = arith.constant 6 : i32
    %c0_i32_54 = arith.constant 0 : i32
    %77 = tpu.memref_slice %arg6[%c6_i32_53, %c0_i32_54] : memref<8x128xf32, #tpu.memory_space<vmem>> -> memref<1x128xf32, #tpu.memory_space<vmem>>
    %78 = tpu.memref_slice %arg8[%c6_i32_51] : memref<9x!tpu.dma_semaphore, #tpu.memory_space<semaphore_mem>> -> memref<1x!tpu.dma_semaphore, #tpu.memory_space<semaphore_mem>>
    %79 = tpu.memref_squeeze %78 : memref<1x!tpu.dma_semaphore, #tpu.memory_space<semaphore_mem>> -> memref<!tpu.dma_semaphore, #tpu.memory_space<semaphore_mem>>
    tpu.wait_dma2 semaphore(%79 : memref<!tpu.dma_semaphore, #tpu.memory_space<semaphore_mem>>) src(%76 : memref<1x128xf32, #tpu.memory_space<any>>) dst(%77 : memref<1x128xf32, #tpu.memory_space<vmem>>)
    %c7_i32_55 = arith.constant 7 : i32
    %c0_i32_56 = arith.constant 0 : i32
    %80 = tpu.memref_slice %arg3[%44, %c0_i32_56] : memref<128x128xf32, #tpu.memory_space<any>> -> memref<1x128xf32, #tpu.memory_space<any>>
    %c7_i32_57 = arith.constant 7 : i32
    %c0_i32_58 = arith.constant 0 : i32
    %81 = tpu.memref_slice %arg6[%c7_i32_57, %c0_i32_58] : memref<8x128xf32, #tpu.memory_space<vmem>> -> memref<1x128xf32, #tpu.memory_space<vmem>>
    %82 = tpu.memref_slice %arg8[%c7_i32_55] : memref<9x!tpu.dma_semaphore, #tpu.memory_space<semaphore_mem>> -> memref<1x!tpu.dma_semaphore, #tpu.memory_space<semaphore_mem>>
    %83 = tpu.memref_squeeze %82 : memref<1x!tpu.dma_semaphore, #tpu.memory_space<semaphore_mem>> -> memref<!tpu.dma_semaphore, #tpu.memory_space<semaphore_mem>>
    tpu.wait_dma2 semaphore(%83 : memref<!tpu.dma_semaphore, #tpu.memory_space<semaphore_mem>>) src(%80 : memref<1x128xf32, #tpu.memory_space<any>>) dst(%81 : memref<1x128xf32, #tpu.memory_space<vmem>>)
    %c0_59 = arith.constant 0 : index
    %c0_60 = arith.constant 0 : index
    %84 = vector.load %arg6[%c0_59, %c0_60] : memref<8x128xf32, #tpu.memory_space<vmem>>, vector<8x128xf32>
    %c0_61 = arith.constant 0 : index
    %c0_62 = arith.constant 0 : index
    %85 = vector.load %arg7[%c0_61, %c0_62] : memref<8x128xf32, #tpu.memory_space<vmem>>, vector<8x128xf32>
    %86 = arith.addf %84, %85 : vector<8x128xf32>
    %c0_63 = arith.constant 0 : index
    %c0_64 = arith.constant 0 : index
    %c0_65 = arith.constant 0 : index
    %87 = vector.load %arg5[%c0_63, %c0_64, %c0_65] : memref<1x8x128xf32, #tpu.memory_space<vmem>>, vector<1x8x128xf32>
    %88 = vector.shape_cast %87 : vector<1x8x128xf32> to vector<8x128xf32>
    %89 = vector.shape_cast %86 : vector<8x128xf32> to vector<1x8x128xf32>
    tpu.vector_store %arg5[%c0_63, %c0_64, %c0_65], %89 {strides = array<i32>} : memref<1x8x128xf32, #tpu.memory_space<vmem>>, vector<1x8x128xf32>,
    return
  }
  func.func @transform_2(%arg0: i32, %arg1: memref<1xi32, #tpu.memory_space<smem>>, %arg2: memref<2x8xi32, #tpu.memory_space<smem>>) -> (i32, i32, i32) {
    %c0_i32 = arith.constant 0 : i32
    %c0_i32_0 = arith.constant 0 : i32
    %c0_i32_1 = arith.constant 0 : i32
    return %arg0, %c0_i32, %c0_i32_0 : i32, i32, i32
  }
}

</mosaic_0001>

<bundles_post_ra>
// kernel: tpu_custom_call.1
= control target key start
LH: loop header
LB: loop body
LE: loop exit
PB: predicated region body
PF: predicated region fallthrough
CT: control target
= control target key end

     0   :  { %s1043_s0 = inlined_call_operand.<no memory space> [shape: s32[1], index: 0, kind: input, shape index: {}]   ;;  %s1044_s1 = inlined_call_operand.vmem [shape: s32[2,8], index: 1, kind: input, shape index: {}]   ;;  %s1045_s2 = inlined_call_operand.hbm [shape: f32[128,128], index: 2, kind: input, shape index: {}]   ;;  %s1046_s3 = inlined_call_operand.hbm [shape: f32[16,128], index: 3, kind: input, shape index: {}]   ;;  %s1047_s4 = inlined_call_operand.hbm [shape: f32[2,8,128], index: 4, kind: output, shape index: {}]  }
   0x1   :  { %9 = sst [smem:[#allocation6]] %s1043_s0  ;;  %s10_s19 = sshll.u32 %s1044_s1, 4  ;;  %s11_s19 = int_to_ptr.vmem [resolvable:$true] %s10_s19 }
   0x2   :  { %s444_s20 = scalar_lea.vmem %s11_s19, 32  ;;  %p449_p1 = scmp.lt.s32.totalorder %s11_s19, %s11_s19 }
   0x3   :  { %p445_p0 = scmp.ne.s32.totalorder %s11_s19, %s444_s20  ;;  %p450_p2 = scmp.lt.s32.totalorder %s444_s20, %s444_s20 }
   0x5   :  { %p451_p3 = por %p450_p2, %p449_p1 }
   0x7   :  { %p452_p4 = pnand %p451_p3, %p445_p0 }
   0x9   :  { %455 = shalt.err (!%p452_p4)  }
   0xa   :  { %s754_s21 = smov [#allocation7]  }
   0xb   :  { %13 = dma.vmem_to_smem %s11_s19, 32, %s754_s21, [#allocation5] }
   0xc   :  { %716 = dma.done.wait [#allocation5], 32 }
   0xd   :  { %717 = vsyncadd [#allocation5], 4294967264 }
   0xe   :  { %15 = sfence }
   0xf   :  { %16 = vsyncpa [#allocation9], 0 }
  0x10   :  { %18 = vsyncpa [#allocation9 + $0x1], 0  ;;  %s796_s0 = smov 0   ;;  %s798_s22 = smov 0  }
  0x11   :  { %s800_s1 = smov 0  }
  0x12 LB: > { %s371_s23 = sadd.s32 4294967295, %s752_s1   ;;  %s813_s24 = sadd.s32 1, %s752_s1   ;;  %s752_s1 = sphi %s800_s1, %s1057_s1   ;;  %s748_s22 = sphi %s798_s22, %s1056_s22   ;;  %s744_s0 = sphi %s796_s0, %s1055_s0  }
  0x13   : > { %s27_s25 = ssub.s32 %s752_s1, %s813_s24  ;;  %s30_s26 = sadd.s32 1, %s748_s22 }
  0x14   : > { %p28_p5 = scmp.eq.s32.totalorder %s27_s25, 0  ;;  %p372_p6 = scmp.ne.s32.totalorder %s27_s25, 0 }
  0x15   : > { %p34_p7 = scmp.eq.s32.totalorder %s752_s1, 1  ;;  %p39_p8 = scmp.ne.s32.totalorder %s748_s22, %s744_s0 }
  0x16   : > { %s822_s27 = scalar_select %p28_p5, %s748_s22, %s30_s26  }
  0x17   : > { %p824_p9 = por %p372_p6, %p34_p7  ;;  %p40_p10 = scmp.eq.s32.totalorder %s371_s23, 1 }
  0x18   : > { %p373_p12 = scmp.ge.s32.totalorder %s752_s1, 2 }
  0x19   : > { %s1050_s28 = scalar_select %p824_p9, 1, 0 }
  0x1a   : > { %p828_p11 = por %p40_p10, %p39_p8  ;;  %49 = sbr.rel (%p373_p12) target bundleno = 276 (0x114), region = 12 }
  0x1b   : > { %s1048_s30 = sand.u32 (!%p373_p12), 1, %s748_s22   ;;  %s835_s5 = sshll.u32 (!%p373_p12), %s752_s1, 7 }
  0x1c   : > { %s1051_s29 = scalar_select %p828_p11, 1, 0 }
  0x1d   : > { %s839_s6 = sshll.u32 (!%p373_p12), %s1048_s30, 3  ;;  %s59_s7 = sld [smem:[#allocation7 + %s835_s5]] (!%p373_p12) }
  0x1e   : > { %s755_s8 = smov (!%p373_p12), [#allocation2]   ;;  %s73_s10 = sadd.s32 (!%p373_p12), 1, %s835_s5 }
  0x1f   : > { %s69_s9 = sshll.u32 (!%p373_p12), %s755_s8, 4  ;;  %s845_s11 = sld [smem:[#allocation7 + %s73_s10]] (!%p373_p12)  ;;  %s843_s9 = int_to_ptr.vmem [resolvable:$true] %s69_s9 }
  0x20   : > { %s90_s12 = sadd.s32 (!%p373_p12), 2, %s835_s5  ;;  %s756_s13 = smov (!%p373_p12), [#allocation2 + $0x1]  }
  0x21   : > { %s86_s14 = sshll.u32 %s756_s13, 4  ;;  %s848_s15 = sld [smem:[#allocation7 + %s90_s12]]  ;;  %s850_s14 = int_to_ptr.vmem [resolvable:$true] %s86_s14 }
  0x22   : > { %s858_s25 = scalar_lea.hbm %s1045_s2, 2048 }
  0x23   : > { %s376_s16 = sshll.u32 %s59_s7, 4 }
  0x24   : > { %s61_s19 = scalar_lea.hbm %s1045_s2, %s376_s16 }
  0x25   : > { %s456_s20 = scalar_lea.hbm %s61_s19, 16  ;;  %p459_p0 = scmp.lt.u32.totalorder %s61_s19, %s1045_s2 }
  0x26   : > { %p457_p13 = scmp.ne.s32.totalorder %s61_s19, %s456_s20  ;;  %p460_p1 = scmp.lt.u32.totalorder %s858_s25, %s456_s20 }
  0x27   : > { %p462_p3 = scmp.lt.u32.totalorder %s456_s20, %s61_s19 }
  0x28   : > { %p461_p2 = por %p460_p1, %p459_p0 }
  0x2a   : > { %p463_p4 = por %p462_p3, %p461_p2 }
  0x2c   : > { %p464_p5 = pnand %p463_p4, %p457_p13 }
  0x2e   : > { %467 = shalt.err (!%p464_p5)  }
  0x2f   : > { %s468_s7 = scalar_lea.vmem %s843_s9, 16  ;;  %s867_s10 = scalar_lea.vmem %s843_s9, 128 }
  0x30   : > { %p469_p6 = scmp.ne.s32.totalorder %s843_s9, %s468_s7  ;;  %p473_p7 = scmp.lt.s32.totalorder %s843_s9, %s843_s9 }
  0x31   : > { %p474_p8 = scmp.lt.s32.totalorder %s867_s10, %s468_s7 }
  0x33   : > { %p475_p10 = por %p474_p8, %p473_p7 }
  0x35   : > { %p476_p12 = pnand %p475_p10, %p469_p6 }
  0x37   : > { %479 = shalt.err (!%p476_p12)  }
  0x38   : > { %72 = dma.hbm_to_vmem [thread:$0]  %s61_s19, 16, %s843_s9, [#allocation4] }
  0x39   : > { %s377_s12 = sshll.u32 %s845_s11, 4  ;;  %s757_s13 = smov [#allocation2 + $0x2]  }
  0x3a   : > { %s103_s16 = sshll.u32 %s757_s13, 4  ;;  %s76_s20 = scalar_lea.hbm %s1045_s2, %s377_s12  ;;  %s877_s16 = int_to_ptr.vmem [resolvable:$true] %s103_s16 }
  0x3b   : > { %s480_s21 = scalar_lea.hbm %s76_s20, 16  ;;  %p483_p0 = scmp.lt.u32.totalorder %s76_s20, %s1045_s2 }
  0x3c   : > { %p481_p13 = scmp.ne.s32.totalorder %s76_s20, %s480_s21  ;;  %p484_p1 = scmp.lt.u32.totalorder %s858_s25, %s480_s21 }
  0x3d   : > { %p486_p3 = scmp.lt.u32.totalorder %s480_s21, %s76_s20 }
  0x3e   : > { %p485_p2 = por %p484_p1, %p483_p0 }
  0x40   : > { %p487_p4 = por %p486_p3, %p485_p2 }
  0x42   : > { %p488_p5 = pnand %p487_p4, %p481_p13 }
  0x44   : > { %491 = shalt.err (!%p488_p5)  }
  0x45   : > { %s492_s11 = scalar_lea.vmem %s850_s14, 16  ;;  %p497_p7 = scmp.lt.s32.totalorder %s850_s14, %s843_s9 }
  0x46   : > { %p493_p6 = scmp.ne.s32.totalorder %s850_s14, %s492_s11  ;;  %p498_p8 = scmp.lt.s32.totalorder %s867_s10, %s492_s11 }
  0x48   : > { %p499_p10 = por %p498_p8, %p497_p7 }
  0x4a   : > { %p500_p12 = pnand %p499_p10, %p493_p6 }
  0x4c   : > { %503 = shalt.err (!%p500_p12)  }
  0x4d   : > { %89 = dma.hbm_to_vmem [thread:$0]  %s76_s20, 16, %s850_s14, [#allocation4 + $0x1] }
  0x4e   : > { %s378_s19 = sshll.u32 %s848_s15, 4  ;;  %s107_s8 = sadd.s32 3, %s835_s5 }
  0x4f   : > { %s93_s13 = scalar_lea.hbm %s1045_s2, %s378_s19  ;;  %s894_s17 = sld [smem:[#allocation7 + %s107_s8]] }
  0x50   : > { %s504_s18 = scalar_lea.hbm %s93_s13, 16  ;;  %p507_p0 = scmp.lt.u32.totalorder %s93_s13, %s1045_s2 }
  0x51   : > { %p505_p13 = scmp.ne.s32.totalorder %s93_s13, %s504_s18  ;;  %p508_p1 = scmp.lt.u32.totalorder %s858_s25, %s504_s18 }
  0x52   : > { %p510_p3 = scmp.lt.u32.totalorder %s504_s18, %s93_s13 }
  0x53   : > { %p509_p2 = por %p508_p1, %p507_p0 }
  0x55   : > { %p511_p4 = por %p510_p3, %p509_p2 }
  0x57   : > { %p512_p5 = pnand %p511_p4, %p505_p13 }
  0x59   : > { %515 = shalt.err (!%p512_p5)  }
  0x5a   : > { %s516_s14 = scalar_lea.vmem %s877_s16, 16  ;;  %p521_p7 = scmp.lt.s32.totalorder %s877_s16, %s843_s9 }
  0x5b   : > { %p517_p6 = scmp.ne.s32.totalorder %s877_s16, %s516_s14  ;;  %p522_p8 = scmp.lt.s32.totalorder %s867_s10, %s516_s14 }
  0x5d   : > { %p523_p10 = por %p522_p8, %p521_p7 }
  0x5f   : > { %p524_p12 = pnand %p523_p10, %p517_p6 }
  0x61   : > { %527 = shalt.err (!%p524_p12)  }
  0x62   : > { %106 = dma.hbm_to_vmem [thread:$0]  %s93_s13, 16, %s877_s16, [#allocation4 + $0x2] }
  0x63   : > { %s124_s15 = sadd.s32 4, %s835_s5  ;;  %s758_s20 = smov [#allocation2 + $0x3]  }
  0x64   : > { %s120_s26 = sshll.u32 %s758_s20, 4  ;;  %s125_s11 = sld [smem:[#allocation7 + %s124_s15]]  ;;  %s121_s26 = int_to_ptr.vmem [resolvable:$true] %s120_s26 }
  0x65   : > { %s759_s19 = smov [#allocation2 + $0x4]   ;;  %s141_s7 = sadd.s32 5, %s835_s5 }
  0x66   : > { %s137_s8 = sshll.u32 %s759_s19, 4  ;;  %s379_s12 = sshll.u32 %s894_s17, 4  ;;  %s909_s8 = int_to_ptr.vmem [resolvable:$true] %s137_s8 }
  0x67   : > { %s110_s23 = scalar_lea.hbm %s1045_s2, %s379_s12  ;;  %s914_s14 = sld [smem:[#allocation7 + %s141_s7]] }
  0x68   : > { %s528_s30 = scalar_lea.hbm %s110_s23, 16  ;;  %p531_p0 = scmp.lt.u32.totalorder %s110_s23, %s1045_s2 }
  0x69   : > { %p529_p13 = scmp.ne.s32.totalorder %s110_s23, %s528_s30  ;;  %p532_p1 = scmp.lt.u32.totalorder %s858_s25, %s528_s30 }
  0x6a   : > { %p534_p3 = scmp.lt.u32.totalorder %s528_s30, %s110_s23 }
  0x6b   : > { %p533_p2 = por %p532_p1, %p531_p0 }
  0x6d   : > { %p535_p4 = por %p534_p3, %p533_p2 }
  0x6f   : > { %p536_p5 = pnand %p535_p4, %p529_p13 }
  0x71   : > { %539 = shalt.err (!%p536_p5)  }
  0x72   : > { %s540_s17 = scalar_lea.vmem %s121_s26, 16  ;;  %p545_p7 = scmp.lt.s32.totalorder %s121_s26, %s843_s9 }
  0x73   : > { %p541_p6 = scmp.ne.s32.totalorder %s121_s26, %s540_s17  ;;  %p546_p8 = scmp.lt.s32.totalorder %s867_s10, %s540_s17 }
  0x75   : > { %p547_p10 = por %p546_p8, %p545_p7 }
  0x77   : > { %p548_p12 = pnand %p547_p10, %p541_p6 }
  0x79   : > { %551 = shalt.err (!%p548_p12)  }
  0x7a   : > { %123 = dma.hbm_to_vmem [thread:$0]  %s110_s23, 16, %s121_s26, [#allocation4 + $0x3] }
  0x7b   : > { %s380_s15 = sshll.u32 %s125_s11, 4  ;;  %s760_s30 = smov [#allocation2 + $0x5]  }
  0x7c   : > { %s127_s7 = scalar_lea.hbm %s1045_s2, %s380_s15  ;;  %s154_s12 = sshll.u32 %s760_s30, 4  ;;  %s155_s12 = int_to_ptr.vmem [resolvable:$true] %s154_s12 }
  0x7d   : > { %s552_s18 = scalar_lea.hbm %s127_s7, 16  ;;  %p555_p0 = scmp.lt.u32.totalorder %s127_s7, %s1045_s2 }
  0x7e   : > { %p553_p13 = scmp.ne.s32.totalorder %s127_s7, %s552_s18  ;;  %p556_p1 = scmp.lt.u32.totalorder %s858_s25, %s552_s18 }
  0x7f   : > { %p558_p3 = scmp.lt.u32.totalorder %s552_s18, %s127_s7 }
  0x80   : > { %p557_p2 = por %p556_p1, %p555_p0 }
  0x82   : > { %p559_p4 = por %p558_p3, %p557_p2 }
  0x84   : > { %p560_p5 = pnand %p559_p4, %p553_p13 }
  0x86   : > { %563 = shalt.err (!%p560_p5)  }
  0x87   : > { %s564_s26 = scalar_lea.vmem %s909_s8, 16  ;;  %p569_p7 = scmp.lt.s32.totalorder %s909_s8, %s843_s9 }
  0x88   : > { %p565_p6 = scmp.ne.s32.totalorder %s909_s8, %s564_s26  ;;  %p570_p8 = scmp.lt.s32.totalorder %s867_s10, %s564_s26 }
  0x8a   : > { %p571_p10 = por %p570_p8, %p569_p7 }
  0x8c   : > { %p572_p12 = pnand %p571_p10, %p565_p6 }
  0x8e   : > { %575 = shalt.err (!%p572_p12)  }
  0x8f   : > { %140 = dma.hbm_to_vmem [thread:$0]  %s127_s7, 16, %s909_s8, [#allocation4 + $0x4] }
  0x90   : > { %s158_s11 = sadd.s32 6, %s835_s5  ;;  %s381_s23 = sshll.u32 %s914_s14, 4 }
  0x91   : > { %s937_s13 = sld [smem:[#allocation7 + %s158_s11]]  ;;  %s144_s20 = scalar_lea.hbm %s1045_s2, %s381_s23 }
  0x92   : > { %s576_s19 = scalar_lea.hbm %s144_s20, 16  ;;  %p579_p0 = scmp.lt.u32.totalorder %s144_s20, %s1045_s2 }
  0x93   : > { %p577_p13 = scmp.ne.s32.totalorder %s144_s20, %s576_s19  ;;  %p580_p1 = scmp.lt.u32.totalorder %s858_s25, %s576_s19 }
  0x94   : > { %p582_p3 = scmp.lt.u32.totalorder %s576_s19, %s144_s20 }
  0x95   : > { %p581_p2 = por %p580_p1, %p579_p0 }
  0x97   : > { %p583_p4 = por %p582_p3, %p581_p2 }
  0x99   : > { %p584_p5 = pnand %p583_p4, %p577_p13 }
  0x9b   : > { %587 = shalt.err (!%p584_p5)  }
  0x9c   : > { %s588_s8 = scalar_lea.vmem %s155_s12, 16  ;;  %p593_p7 = scmp.lt.s32.totalorder %s155_s12, %s843_s9 }
  0x9d   : > { %p589_p6 = scmp.ne.s32.totalorder %s155_s12, %s588_s8  ;;  %p594_p8 = scmp.lt.s32.totalorder %s867_s10, %s588_s8 }
  0x9f   : > { %p595_p10 = por %p594_p8, %p593_p7 }
  0xa1   : > { %p596_p12 = pnand %p595_p10, %p589_p6 }
  0xa3   : > { %599 = shalt.err (!%p596_p12)  }
  0xa4   : > { %157 = dma.hbm_to_vmem [thread:$0]  %s144_s20, 16, %s155_s12, [#allocation4 + $0x5] }
  0xa5   : > { %s761_s14 = smov [#allocation2 + $0x6]   ;;  %s175_s21 = sadd.s32 7, %s835_s5 }
  0xa6   : > { %s171_s7 = sshll.u32 %s761_s14, 4  ;;  %s176_s16 = sld [smem:[#allocation7 + %s175_s21]]  ;;  %s172_s7 = int_to_ptr.vmem [resolvable:$true] %s171_s7 }
  0xa7   : > { %s949_s26 = sld [smem:[#allocation6]]  ;;  %s382_s11 = sshll.u32 %s937_s13, 4 }
  0xa8   : > { %s762_s23 = smov [#allocation2 + $0x7]   ;;  %s161_s30 = scalar_lea.hbm %s1045_s2, %s382_s11 }
  0xa9   : > { %s188_s17 = sshll.u32 %s762_s23, 4  ;;  %s600_s12 = scalar_lea.hbm %s161_s30, 16  ;;  %s955_s17 = int_to_ptr.vmem [resolvable:$true] %s188_s17 }
  0xaa   : > { %p601_p13 = scmp.ne.s32.totalorder %s161_s30, %s600_s12  ;;  %p603_p0 = scmp.lt.u32.totalorder %s161_s30, %s1045_s2 }
  0xab   : > { %p604_p1 = scmp.lt.u32.totalorder %s858_s25, %s600_s12  ;;  %p606_p3 = scmp.lt.u32.totalorder %s600_s12, %s161_s30 }
  0xad   : > { %p605_p2 = por %p604_p1, %p603_p0 }
  0xaf   : > { %p607_p4 = por %p606_p3, %p605_p2 }
  0xb1   : > { %p608_p5 = pnand %p607_p4, %p601_p13 }
  0xb3   : > { %611 = shalt.err (!%p608_p5)  }
  0xb4   : > { %s612_s13 = scalar_lea.vmem %s172_s7, 16  ;;  %p617_p7 = scmp.lt.s32.totalorder %s172_s7, %s843_s9 }
  0xb5   : > { %p613_p6 = scmp.ne.s32.totalorder %s172_s7, %s612_s13  ;;  %p618_p8 = scmp.lt.s32.totalorder %s867_s10, %s612_s13 }
  0xb7   : > { %p619_p10 = por %p618_p8, %p617_p7 }
  0xb9   : > { %p620_p12 = pnand %p619_p10, %p613_p6 }
  0xbb   : > { %623 = shalt.err (!%p620_p12)  }
  0xbc   : > { %174 = dma.hbm_to_vmem [thread:$0]  %s161_s30, 16, %s172_s7, [#allocation4 + $0x6] }
  0xbd   : > { %p408_p11 = scmp.eq.s32.totalorder %s752_s1, 0  ;;  %s383_s8 = sshll.u32 %s176_s16, 4 }
  0xbe   : > { %s178_s11 = scalar_lea.hbm %s1045_s2, %s383_s8  ;;  %s385_s23 = sshll.u32 %s949_s26, 4 }
  0xbf   : > { %s624_s15 = scalar_lea.hbm %s178_s11, 16  ;;  %p627_p0 = scmp.lt.u32.totalorder %s178_s11, %s1045_s2 }
  0xc0   : > { %p625_p13 = scmp.ne.s32.totalorder %s178_s11, %s624_s15  ;;  %p628_p1 = scmp.lt.u32.totalorder %s858_s25, %s624_s15 }
  0xc1   : > { %p630_p3 = scmp.lt.u32.totalorder %s624_s15, %s178_s11 }
  0xc2   : > { %p629_p2 = por %p628_p1, %p627_p0 }
  0xc4   : > { %p631_p4 = por %p630_p3, %p629_p2 }
  0xc6   : > { %p632_p5 = pnand %p631_p4, %p625_p13 }
  0xc8   : > { %635 = shalt.err (!%p632_p5)  }
  0xc9   : > { %s636_s7 = scalar_lea.vmem %s955_s17, 16  ;;  %p641_p7 = scmp.lt.s32.totalorder %s955_s17, %s843_s9 }
  0xca   : > { %p637_p6 = scmp.ne.s32.totalorder %s955_s17, %s636_s7  ;;  %p642_p8 = scmp.lt.s32.totalorder %s867_s10, %s636_s7 }
  0xcc   : > { %p643_p10 = por %p642_p8, %p641_p7 }
  0xce   : > { %p644_p12 = pnand %p643_p10, %p637_p6 }
  0xd0   : > { %647 = shalt.err (!%p644_p12)  }
  0xd1   : > { %191 = dma.hbm_to_vmem [thread:$0]  %s178_s11, 16, %s955_s17, [#allocation4 + $0x7] }
  0xd2   : > { %s197_s26 = scalar_lea.hbm %s1046_s3, %s385_s23  ;;  %s763_s30 = smov [#allocation3]  }
  0xd3   : > { %s206_s20 = sshll.u32 %s763_s30, 4  ;;  %s648_s18 = scalar_lea.hbm %s197_s26, 128  ;;  %s207_s20 = int_to_ptr.vmem [resolvable:$true] %s206_s20 }
  0xd4   : > { %p649_p13 = scmp.ne.s32.totalorder %s197_s26, %s648_s18  ;;  %s652_s13 = scalar_lea.hbm %s1046_s3, 256 }
  0xd5   : > { %p653_p2 = scmp.lt.u32.totalorder %s197_s26, %s1046_s3  ;;  %p654_p3 = scmp.lt.u32.totalorder %s652_s13, %s648_s18 }
  0xd6   : > { %p650_p0 = pnand %p649_p13, %p408_p11  ;;  %p656_p5 = scmp.lt.u32.totalorder %s648_s18, %s197_s26 }
  0xd7   : > { %p655_p4 = por %p654_p3, %p653_p2 }
  0xd8   : > { %p651_p1 = pneg %p650_p0 }
  0xd9   : > { %p657_p6 = por %p656_p5, %p655_p4 }
  0xdb   : > { %p658_p7 = pnand %p657_p6, %p651_p1 }
  0xdd   : > { %661 = shalt.err (!%p658_p7)  }
  0xde   : > { %s662_s17 = scalar_lea.vmem %s207_s20, 128  ;;  %p669_p13 = scmp.lt.s32.totalorder %s207_s20, %s207_s20 }
  0xdf   : > { %p663_p8 = scmp.ne.s32.totalorder %s207_s20, %s662_s17  ;;  %p670_p0 = scmp.lt.s32.totalorder %s662_s17, %s662_s17 }
  0xe1   : > { %p664_p10 = pnand %p663_p8, %p408_p11  ;;  %p671_p9 = por %p670_p0, %p669_p13 }
  0xe3   : > { %p665_p12 = pneg %p664_p10 }
  0xe5   : > { %p672_p2 = pnand %p671_p9, %p665_p12 }
  0xe7   : > { %675 = shalt.err (!%p672_p2)  }
  0xe8   : > { %400 = dma.hbm_to_vmem [thread:$0]  (%p408_p11), %s197_s26, 128, %s207_s20, [#allocation4 + $0x8] }
  0xe9   : > { %s56_s21 = scalar_lea.vmem [#allocation8], %s839_s6 }
  0xea   : > { %719 = dma.done.wait (%p408_p11), [#allocation4 + $0x8], 128 }
  0xeb   : > { %721 = vsyncadd (%p408_p11), [#allocation4 + $0x8], 4294967168 }
  0xec   : > { %722 = dma.done.wait [#allocation4], 16 }
  0xed   : > { %723 = vsyncadd [#allocation4], 4294967280 }
  0xee   : > { %724 = dma.done.wait [#allocation4 + $0x1], 16 }
  0xef   : > { %725 = vsyncadd [#allocation4 + $0x1], 4294967280 }
  0xf0   : > { %726 = dma.done.wait [#allocation4 + $0x2], 16 }
  0xf1   : > { %727 = vsyncadd [#allocation4 + $0x2], 4294967280 }
  0xf2   : > { %728 = dma.done.wait [#allocation4 + $0x3], 16 }
  0xf3   : > { %729 = vsyncadd [#allocation4 + $0x3], 4294967280 }
  0xf4   : > { %730 = dma.done.wait [#allocation4 + $0x4], 16 }
  0xf5   : > { %731 = vsyncadd [#allocation4 + $0x4], 4294967280 }
  0xf6   : > { %732 = dma.done.wait [#allocation4 + $0x5], 16 }
  0xf7   : > { %733 = vsyncadd [#allocation4 + $0x5], 4294967280 }
  0xf8   : > { %734 = dma.done.wait [#allocation4 + $0x6], 16 }
  0xf9   : > { %735 = vsyncadd [#allocation4 + $0x6], 4294967280 }
  0xfa   : > { %736 = dma.done.wait [#allocation4 + $0x7], 16 }
  0xfb   : > { %737 = vsyncadd [#allocation4 + $0x7], 4294967280  ;;  %s248_s6 = sshll.u32 %s56_s21, 4  ;;  %v230_v0 = vld [vmem:[#allocation2] sm:$0xff]  ;;  %v231_v1 = vld [vmem:[#allocation3] sm:$0xff]  ;;  %s1002_s15 = scalar_lea.hbm %s1047_s4, %s835_s5  ;;  %s1004_s6 = int_to_ptr.vmem [resolvable:$true] %s248_s6 }
  0xfc   : > { %v232_v2 = vadd.f32 %v231_v1, %v230_v0  ;;  %s1052_s19 = sand.u32 1, %s748_s22   ;;  %s676_s7 = scalar_lea.vmem %s1004_s6, 128 }
  0xfd   : > { %s235_s12 = scalar_lea.sflag [#allocation9], %s1052_s19  ;;  %p677_p9 = scmp.ne.s32.totalorder %s1004_s6, %s676_s7 }
  0xfe   : > { %233 = vst [vmem:[%s56_s21] sm:$0xff] %v232_v2  ;;  %p1053_p11 = scmp.ne.s32.totalorder %s1050_s28, 0  ;;  %s764_s25 = smov [#allocation8]  }
  0xff   : > { %s680_s16 = sshll.u32 %s764_s25, 4  ;;  %s681_s16 = int_to_ptr.vmem [resolvable:$false] %s680_s16 }
 0x100   : > { %p678_p1 = pnand %p677_p9, %p1053_p11  ;;  %s682_s26 = scalar_lea.vmem %s681_s16, 256 }
 0x101   : > { %p683_p4 = scmp.lt.s32.totalorder %s1004_s6, %s681_s16  ;;  %p684_p5 = scmp.lt.s32.totalorder %s682_s26, %s676_s7 }
 0x102   : > { %p679_p3 = pneg %p678_p1 }
 0x103   : > { %p685_p6 = por %p684_p5, %p683_p4 }
 0x105   : > { %p686_p7 = pnand %p685_p6, %p679_p3 }
 0x107   : > { %689 = shalt.err (!%p686_p7)
}
 0x108   : > { %s690_s5 = scalar_lea.hbm %s1002_s15, 128  ;;  %s694_s18 = scalar_lea.hbm %s1047_s4, 256 }
 0x109   : > { %p691_p8 = scmp.ne.s32.totalorder %s1002_s15, %s690_s5  ;;  %p695_p13 = scmp.lt.u32.totalorder %s1002_s15, %s1047_s4 }
 0x10a   : > { %p696_p0 = scmp.lt.u32.totalorder %s694_s18, %s690_s5  ;;  %p698_p9 = scmp.lt.u32.totalorder %s690_s5, %s1002_s15 }
 0x10b   : > { %p692_p10 = pnand %p691_p8, %p1053_p11 }
 0x10c   : > { %p697_p2 = por %p696_p0, %p695_p13 }
 0x10d   : > { %p693_p12 = pneg %p692_p10 }
 0x10e   : > { %p699_p1 = por %p698_p9, %p697_p2 }
 0x110   : > { %p700_p3 = pnand %p699_p1, %p693_p12 }
 0x112   : > { %703 = shalt.err (!%p700_p3)
}
 0x113   : > { %402 = dma.vmem_to_hbm [thread:$0]  (%p1053_p11), %s1004_s6, 128, %s1002_s15, %s235_s12  }
 0x114 PF: > { %p409_p4 = scmp.ge.s32.totalorder %s752_s1, 1  ;;  %s260_s13 = sand.u32 1, %s744_s0  }
 0x115   : > { %p1054_p5 = scmp.ne.s32.totalorder %s1051_s29, 0  ;;  %s261_s8 = scalar_lea.sflag [#allocation9], %s260_s13 }
 0x117   : > { %p405_p6 = pnand %p409_p4, %p1054_p5 }
 0x119   : > { %739 = dma.done.wait (!%p405_p6), %s261_s8, 128  }
 0x11a   : > { %741 = vsyncadd (!%p405_p6), %s261_s8, 4294967168  ;;  %p21_p7 = scmp.ge.s32.totalorder %s813_s24, 3   ;;  %s1055_s0 = smov %s748_s22 }
 0x11b   : > { %s1056_s22 = smov %s822_s27  ;;  %s1057_s1 = smov %s813_s24 }
 0x11c   :  { %23 = sbr.rel (!%p21_p7) target bundleno = 18 (0x12), region = 116 }
 0x123   :  { %266 = vsyncpa [#allocation9], 1 }
 0x124   :  { %268 = vsyncpa [#allocation9 + $0x1], 1 }
 0x125   :  { %269 = vsyncmov [#allocation4] }
 0x128   :  { %s270_s1 = vpop.sfrf %269 }
 0x129   :  { %p390_p11 = scmp.ne.s32.totalorder %s270_s1, 0 }
 0x12b   :  { %274 = shalt.err (%p390_p11)  }
 0x12c   :  { %276 = vsyncmov [#allocation4 + $0x1] }
 0x12f   :  { %s277_s28 = vpop.sfrf %276 }
 0x130   :  { %p391_p8 = scmp.ne.s32.totalorder %s277_s28, 0 }
 0x132   :  { %281 = shalt.err (%p391_p8)  }
 0x133   :  { %283 = vsyncmov [#allocation4 + $0x2] }
 0x136   :  { %s284_s29 = vpop.sfrf %283 }
 0x137   :  { %p392_p10 = scmp.ne.s32.totalorder %s284_s29, 0 }
 0x139   :  { %288 = shalt.err (%p392_p10)  }
 0x13a   :  { %290 = vsyncmov [#allocation4 + $0x3] }
 0x13d   :  { %s291_s14 = vpop.sfrf %290 }
 0x13e   :  { %p393_p12 = scmp.ne.s32.totalorder %s291_s14, 0 }
 0x140   :  { %295 = shalt.err (%p393_p12)  }
 0x141   :  { %297 = vsyncmov [#allocation4 + $0x4] }
 0x144   :  { %s298_s24 = vpop.sfrf %297 }
 0x145   :  { %p394_p13 = scmp.ne.s32.totalorder %s298_s24, 0 }
 0x147   :  { %302 = shalt.err (%p394_p13)  }
 0x148   :  { %304 = vsyncmov [#allocation4 + $0x5] }
 0x14b   :  { %s305_s2 = vpop.sfrf %304 }
 0x14c   :  { %p395_p0 = scmp.ne.s32.totalorder %s305_s2, 0 }
 0x14e   :  { %309 = shalt.err (%p395_p0)  }
 0x14f   :  { %311 = vsyncmov [#allocation4 + $0x6] }
 0x152   :  { %s312_s3 = vpop.sfrf %311 }
 0x153   :  { %p396_p2 = scmp.ne.s32.totalorder %s312_s3, 0 }
 0x155   :  { %316 = shalt.err (%p396_p2)  }
 0x156   :  { %318 = vsyncmov [#allocation4 + $0x7] }
 0x159   :  { %s319_s4 = vpop.sfrf %318 }
 0x15a   :  { %p397_p9 = scmp.ne.s32.totalorder %s319_s4, 0 }
 0x15c   :  { %323 = shalt.err (%p397_p9)  }
 0x15d   :  { %325 = vsyncmov [#allocation4 + $0x8] }
 0x160   :  { %s326_s0 = vpop.sfrf %325 }
 0x161   :  { %p398_p1 = scmp.ne.s32.totalorder %s326_s0, 0 }
 0x163   :  { %330 = shalt.err (%p398_p1)  }

</bundles_post_ra>
